<compile_context>
chip_gen: v7x
topology: tpu7x:2x2x1
jax: 0.10.0
libtpu: 0.0.40
codegen_flags: <defaults>
</compile_context>

<pallas_src>
import jax
import jax.numpy as jnp
from jax.experimental import pallas as pl
from jax.experimental.pallas import tpu as pltpu

NEG_SLOPE = 0.01   # PyTorch nn.LeakyReLU default negative_slope
LANE = 128


def _leaky_relu(x):
    return jnp.where(x > 0, x, NEG_SLOPE * x)


def mlp_kernel(x_ref, slab_ref, w2_ref, w3_ref, o_ref):
    """Fused 4-128-64-32-1 MLP with the batch on the lane (minor) axis.

    x_ref    : (din, tb)       f32, batch along lanes
    slab_ref : (d1, din + 5)   f32, packed [w1 | b1 | b2 | b3 | w4_col | b4]
    w2_ref   : (d2, d1)        f32 or bf16
    w3_ref   : (d3, d2)        f32 or bf16
    o_ref    : (1, tb)         f32, lane-dense output row
    """
    din = x_ref.shape[0]
    d2 = w2_ref.shape[0]
    d3 = w3_ref.shape[0]

    # ---- Layer 1 (d1 x din @ din x tb) on the VPU --------------------------
    # K=din(=4) is too shallow to feed the MXU efficiently; do it as `din`
    # broadcast multiply-adds instead (VALU slots have slack here).
    h = slab_ref[:, 0:1] * x_ref[0:1, :]
    for k in range(1, din):
        h = h + slab_ref[:, k:k + 1] * x_ref[k:k + 1, :]
    h = _leaky_relu(h + slab_ref[:, din:din + 1])                     # (d1, tb) f32

    # ---- Layers 2 & 3 on the MXU (bf16 operands if wrapper passed bf16) ----
    h = jnp.dot(w2_ref[...], h.astype(w2_ref.dtype),
                preferred_element_type=jnp.float32)                   # (d2, tb) f32
    h = _leaky_relu(h + slab_ref[0:d2, din + 1:din + 2])
    h = jnp.dot(w3_ref[...], h.astype(w3_ref.dtype),
                preferred_element_type=jnp.float32)                   # (d3, tb) f32
    h = _leaky_relu(h + slab_ref[0:d3, din + 2:din + 3])

    # ---- Final d3 -> 1 layer on VPU/XLU: lane-dense (1, tb) output ----------
    w4c = slab_ref[0:d3, din + 3:din + 4]                             # (d3, 1)
    b4 = slab_ref[0:1, din + 4:din + 5]                               # (1, 1)
    y = jnp.sum(h * w4c, axis=0, keepdims=True) + b4                  # (1, tb)
    o_ref[...] = _leaky_relu(y).astype(o_ref.dtype)


def _round_up(n, m):
    return ((n + m - 1) // m) * m


def _choose_grid(batch, tb_max):
    """Balanced, lane-aligned batch tiling.  Grid forced even (>=2) so the
    'parallel' axis splits evenly across v7x's two TensorCores; tiles are
    rebalanced so padding waste is <128 lanes per tile."""
    tb_max = max(LANE, (tb_max // LANE) * LANE)
    b_pad = _round_up(max(batch, 1), LANE)
    if b_pad <= LANE:
        return 1, LANE                       # tiny batch: single 128-lane tile
    grid = max(2, pl.cdiv(b_pad, tb_max))
    if grid % 2:
        grid += 1
    tb = _round_up(pl.cdiv(b_pad, grid), LANE)
    return grid, tb


def this_model3_forward(x, params, *, tb=8192, use_bf16_dots=True):
    """x: (B, 4) float32.  params in PyTorch layout: w{i}: (out,in), b{i}: (out,)."""
    B, din = x.shape
    w1, b1 = params["w1"], params["b1"]
    w2, b2 = params["w2"], params["b2"]
    w3, b3 = params["w3"], params["b3"]
    w4, b4 = params["w4"], params["b4"]
    d1, d2, d3, dout = w1.shape[0], w2.shape[0], w3.shape[0], w4.shape[0]
    assert w1.shape[1] == din and w2.shape[1] == d1 and w3.shape[1] == d2
    assert w4.shape == (dout, d3) and dout == 1
    assert d1 >= max(d2, d3, dout)

    grid, tb = _choose_grid(B, tb)
    b_pad = grid * tb

    # Layout plumbing outside the kernel: batch on lanes, zero-padded.
    x_t = jnp.pad(x.astype(jnp.float32), ((0, b_pad - B), (0, 0))).T   # (din, b_pad)

    # Pack all "column-shaped" operands into one resident slab:
    #   cols [0:din] = w1, col din = b1, din+1 = b2, din+2 = b3,
    #   col din+3 = w4 row (as a column), col din+4 = b4.
    slab = jnp.zeros((d1, din + 5), jnp.float32)
    slab = slab.at[:, 0:din].set(w1.astype(jnp.float32))
    slab = slab.at[:, din].set(b1.astype(jnp.float32))
    slab = slab.at[:d2, din + 1].set(b2.astype(jnp.float32))
    slab = slab.at[:d3, din + 2].set(b3.astype(jnp.float32))
    slab = slab.at[:d3, din + 3].set(w4[0, :].astype(jnp.float32))
    slab = slab.at[0, din + 4].set(b4[0].astype(jnp.float32))

    cdt = jnp.bfloat16 if use_bf16_dots else jnp.float32
    w2c = w2.astype(cdt)
    w3c = w3.astype(cdt)

    # Generous scoped-VMEM upper bound (v5e's default is only 16 MiB); well
    # under every chip's physical VMEM.
    vmem_limit = int(min(max(3072 * tb + (4 << 20), 16 << 20), 48 << 20))

    full = lambda a: pl.BlockSpec(a.shape, lambda i: (0, 0))   # resident operand

    out = pl.pallas_call(
        mlp_kernel,
        out_shape=jax.ShapeDtypeStruct((dout, b_pad), jnp.float32),
        grid_spec=pltpu.PrefetchScalarGridSpec(
            num_scalar_prefetch=0,
            grid=(grid,),
            in_specs=[
                pl.BlockSpec((din, tb), lambda i: (0, i)),
                full(slab), full(w2c), full(w3c),
            ],
            out_specs=pl.BlockSpec((dout, tb), lambda i: (0, i)),
        ),
        compiler_params=pltpu.CompilerParams(
            dimension_semantics=("parallel",),
            vmem_limit_bytes=vmem_limit),
    )(x_t, slab, w2c, w3c)

    return out[:, :B].T                                        # (B, 1)


def init_params(key, architecture="4-128-64-32-1"):
    """Deterministic init mimicking nn.Linear's uniform(-1/sqrt(in), 1/sqrt(in))."""
    dims = [int(d) for d in architecture.split("-")]
    params = {}
    for li, (d_in, d_out) in enumerate(zip(dims[:-1], dims[1:]), start=1):
        key, kw, kb = jax.random.split(key, 3)
        bound = 1.0 / jnp.sqrt(jnp.float32(d_in))
        params[f"w{li}"] = jax.random.uniform(kw, (d_out, d_in), jnp.float32, -bound, bound)
        params[f"b{li}"] = jax.random.uniform(kb, (d_out,), jnp.float32, -bound, bound)
    return params


def reference_forward(x, params):
    h = x
    for li in range(1, 5):
        h = h @ params[f"w{li}"].T + params[f"b{li}"]      # nn.Linear semantics
        h = jnp.where(h > 0, h, NEG_SLOPE * h)
    return h


if __name__ == "__main__":
    key = jax.random.PRNGKey(0)
    kx, kp = jax.random.split(key)
    params = init_params(kp, "4-128-64-32-1")

    # Small primary input consistent with the module (input dim = 4).
    B = 16
    x = jax.random.normal(kx, (B, 4), jnp.float32)
    ref = reference_forward(x, params)

    # Default path: bf16 MXU operands, f32 accumulation / elementwise.
    out_bf16 = jax.block_until_ready(this_model3_forward(x, params))
    assert out_bf16.shape == (B, 1)
    assert jnp.allclose(out_bf16, ref, atol=5e-2, rtol=5e-2)

    # Exact-f32 path: matches the reference tightly.
    out_f32 = jax.block_until_ready(this_model3_forward(x, params, use_bf16_dots=False))
    assert jnp.allclose(out_f32, ref, atol=1e-4, rtol=1e-4)

    # Non-multiple batch: exercises padding, tile rebalancing and the 2-step grid.
    B2 = 400
    x2 = jax.random.normal(kx, (B2, 4), jnp.float32)
    ref2 = reference_forward(x2, params)
    out2 = jax.block_until_ready(this_model3_forward(x2, params, use_bf16_dots=False))
    assert out2.shape == (B2, 1)
    assert jnp.allclose(out2, ref2, atol=1e-4, rtol=1e-4)

    print("KERNEL_OK")
</pallas_src>

<mosaic_0001>
module attributes {stable_mosaic.version = 11 : i64} {
  func.func @mlp_kernel(%arg0: i32, %arg1: memref<4x128xf32, #tpu.memory_space<vmem>>, %arg2: memref<128x9xf32, #tpu.memory_space<vmem>>, %arg3: memref<64x128xbf16, #tpu.memory_space<vmem>>, %arg4: memref<32x64xbf16, #tpu.memory_space<vmem>>, %arg5: memref<1x128xf32, #tpu.memory_space<vmem>>) attributes {dimension_semantics = [#tpu.dimension_semantics<parallel>], iteration_bounds = array<i64: 1>, scalar_prefetch = 0 : i64, scratch_operands = 0 : i64, tpu.core_type = #tpu.core_type<tc>, window_params = [{transform_indices = @transform_0, window_bounds = array<i64: 4, 128>}, {pipeline_mode = #tpu.pipeline_mode<synchronous>, transform_indices = @transform_1, window_bounds = array<i64: 128, 9>}, {pipeline_mode = #tpu.pipeline_mode<synchronous>, transform_indices = @transform_2, window_bounds = array<i64: 64, 128>}, {pipeline_mode = #tpu.pipeline_mode<synchronous>, transform_indices = @transform_3, window_bounds = array<i64: 32, 64>}, {transform_indices = @transform_4, window_bounds = array<i64: 1, 128>}]} {
    %c0 = arith.constant 0 : index
    %c0_0 = arith.constant 0 : index
    %0 = vector.load %arg2[%c0, %c0_0] : memref<128x9xf32, #tpu.memory_space<vmem>>, vector<128x1xf32>
    %c0_1 = arith.constant 0 : index
    %c0_2 = arith.constant 0 : index
    %1 = vector.load %arg1[%c0_1, %c0_2] : memref<4x128xf32, #tpu.memory_space<vmem>>, vector<1x128xf32>
    %2 = vector.broadcast %0 : vector<128x1xf32> to vector<128x128xf32>
    %3 = vector.broadcast %1 : vector<1x128xf32> to vector<128x128xf32>
    %4 = arith.mulf %2, %3 : vector<128x128xf32>
    %c0_3 = arith.constant 0 : index
    %c1 = arith.constant 1 : index
    %5 = vector.load %arg2[%c0_3, %c1] : memref<128x9xf32, #tpu.memory_space<vmem>>, vector<128x1xf32>
    %c1_4 = arith.constant 1 : index
    %c0_5 = arith.constant 0 : index
    %6 = vector.load %arg1[%c1_4, %c0_5] : memref<4x128xf32, #tpu.memory_space<vmem>>, vector<1x128xf32>
    %7 = vector.broadcast %5 : vector<128x1xf32> to vector<128x128xf32>
    %8 = vector.broadcast %6 : vector<1x128xf32> to vector<128x128xf32>
    %9 = arith.mulf %7, %8 : vector<128x128xf32>
    %10 = arith.addf %4, %9 : vector<128x128xf32>
    %c0_6 = arith.constant 0 : index
    %c2 = arith.constant 2 : index
    %11 = vector.load %arg2[%c0_6, %c2] : memref<128x9xf32, #tpu.memory_space<vmem>>, vector<128x1xf32>
    %c2_7 = arith.constant 2 : index
    %c0_8 = arith.constant 0 : index
    %12 = vector.load %arg1[%c2_7, %c0_8] : memref<4x128xf32, #tpu.memory_space<vmem>>, vector<1x128xf32>
    %13 = vector.broadcast %11 : vector<128x1xf32> to vector<128x128xf32>
    %14 = vector.broadcast %12 : vector<1x128xf32> to vector<128x128xf32>
    %15 = arith.mulf %13, %14 : vector<128x128xf32>
    %16 = arith.addf %10, %15 : vector<128x128xf32>
    %c0_9 = arith.constant 0 : index
    %c3 = arith.constant 3 : index
    %17 = vector.load %arg2[%c0_9, %c3] : memref<128x9xf32, #tpu.memory_space<vmem>>, vector<128x1xf32>
    %c3_10 = arith.constant 3 : index
    %c0_11 = arith.constant 0 : index
    %18 = vector.load %arg1[%c3_10, %c0_11] : memref<4x128xf32, #tpu.memory_space<vmem>>, vector<1x128xf32>
    %19 = vector.broadcast %17 : vector<128x1xf32> to vector<128x128xf32>
    %20 = vector.broadcast %18 : vector<1x128xf32> to vector<128x128xf32>
    %21 = arith.mulf %19, %20 : vector<128x128xf32>
    %22 = arith.addf %16, %21 : vector<128x128xf32>
    %c0_12 = arith.constant 0 : index
    %c4 = arith.constant 4 : index
    %23 = vector.load %arg2[%c0_12, %c4] : memref<128x9xf32, #tpu.memory_space<vmem>>, vector<128x1xf32>
    %24 = vector.broadcast %23 : vector<128x1xf32> to vector<128x128xf32>
    %25 = arith.addf %22, %24 : vector<128x128xf32>
    %cst = arith.constant 0.000000e+00 : f32
    %26 = vector.broadcast %cst : f32 to vector<128x128xf32>
    %27 = arith.cmpf ogt, %25, %26 : vector<128x128xf32>
    %cst_13 = arith.constant 0.00999999977 : f32
    %28 = vector.broadcast %cst_13 : f32 to vector<128x128xf32>
    %29 = arith.mulf %28, %25 : vector<128x128xf32>
    %30 = arith.select %27, %25, %29 : vector<128x128xi1>, vector<128x128xf32>
    %c0_14 = arith.constant 0 : index
    %c0_15 = arith.constant 0 : index
    %31 = vector.load %arg3[%c0_14, %c0_15] : memref<64x128xbf16, #tpu.memory_space<vmem>>, vector<64x128xbf16>
    %32 = arith.truncf %30 : vector<128x128xf32> to vector<128x128xbf16>
    %cst_16 = arith.constant dense<0.000000e+00> : vector<64x128xf32>
    %33 = tpu.matmul %31, %32, %cst_16 {dimension_numbers = #tpu.dot_dimension_numbers<[1], [0], [0], [1], [0, 0, 1, 1], [], []>} : vector<64x128xbf16>, vector<128x128xbf16>, vector<64x128xf32> -> vector<64x128xf32>
    %c0_17 = arith.constant 0 : index
    %c5 = arith.constant 5 : index
    %34 = vector.load %arg2[%c0_17, %c5] : memref<128x9xf32, #tpu.memory_space<vmem>>, vector<64x1xf32>
    %35 = vector.broadcast %34 : vector<64x1xf32> to vector<64x128xf32>
    %36 = arith.addf %33, %35 : vector<64x128xf32>
    %cst_18 = arith.constant 0.000000e+00 : f32
    %37 = vector.broadcast %cst_18 : f32 to vector<64x128xf32>
    %38 = arith.cmpf ogt, %36, %37 : vector<64x128xf32>
    %cst_19 = arith.constant 0.00999999977 : f32
    %39 = vector.broadcast %cst_19 : f32 to vector<64x128xf32>
    %40 = arith.mulf %39, %36 : vector<64x128xf32>
    %41 = arith.select %38, %36, %40 : vector<64x128xi1>, vector<64x128xf32>
    %c0_20 = arith.constant 0 : index
    %c0_21 = arith.constant 0 : index
    %42 = vector.load %arg4[%c0_20, %c0_21] : memref<32x64xbf16, #tpu.memory_space<vmem>>, vector<32x64xbf16>
    %43 = arith.truncf %41 : vector<64x128xf32> to vector<64x128xbf16>
    %cst_22 = arith.constant dense<0.000000e+00> : vector<32x128xf32>
    %44 = tpu.matmul %42, %43, %cst_22 {dimension_numbers = #tpu.dot_dimension_numbers<[1], [0], [0], [1], [0, 0, 1, 1], [], []>} : vector<32x64xbf16>, vector<64x128xbf16>, vector<32x128xf32> -> vector<32x128xf32>
    %c0_23 = arith.constant 0 : index
    %c6 = arith.constant 6 : index
    %45 = vector.load %arg2[%c0_23, %c6] : memref<128x9xf32, #tpu.memory_space<vmem>>, vector<32x1xf32>
    %46 = vector.broadcast %45 : vector<32x1xf32> to vector<32x128xf32>
    %47 = arith.addf %44, %46 : vector<32x128xf32>
    %cst_24 = arith.constant 0.000000e+00 : f32
    %48 = vector.broadcast %cst_24 : f32 to vector<32x128xf32>
    %49 = arith.cmpf ogt, %47, %48 : vector<32x128xf32>
    %cst_25 = arith.constant 0.00999999977 : f32
    %50 = vector.broadcast %cst_25 : f32 to vector<32x128xf32>
    %51 = arith.mulf %50, %47 : vector<32x128xf32>
    %52 = arith.select %49, %47, %51 : vector<32x128xi1>, vector<32x128xf32>
    %c0_26 = arith.constant 0 : index
    %c7 = arith.constant 7 : index
    %53 = vector.load %arg2[%c0_26, %c7] : memref<128x9xf32, #tpu.memory_space<vmem>>, vector<32x1xf32>
    %c0_27 = arith.constant 0 : index
    %c8 = arith.constant 8 : index
    %54 = vector.load %arg2[%c0_27, %c8] : memref<128x9xf32, #tpu.memory_space<vmem>>, vector<1x1xf32>
    %55 = vector.broadcast %53 : vector<32x1xf32> to vector<32x128xf32>
    %56 = arith.mulf %52, %55 : vector<32x128xf32>
    %cst_28 = arith.constant dense<0.000000e+00> : vector<128xf32>
    %57 = vector.multi_reduction <add>, %56, %cst_28 [0] : vector<32x128xf32> to vector<128xf32>
    %58 = vector.shape_cast %57 : vector<128xf32> to vector<1x128xf32>
    %59 = vector.broadcast %54 : vector<1x1xf32> to vector<1x128xf32>
    %60 = arith.addf %58, %59 : vector<1x128xf32>
    %cst_29 = arith.constant 0.000000e+00 : f32
    %61 = vector.broadcast %cst_29 : f32 to vector<1x128xf32>
    %62 = arith.cmpf ogt, %60, %61 : vector<1x128xf32>
    %cst_30 = arith.constant 0.00999999977 : f32
    %63 = vector.broadcast %cst_30 : f32 to vector<1x128xf32>
    %64 = arith.mulf %63, %60 : vector<1x128xf32>
    %65 = arith.select %62, %60, %64 : vector<1x128xi1>, vector<1x128xf32>
    %c0_31 = arith.constant 0 : index
    %c0_32 = arith.constant 0 : index
    %66 = vector.load %arg5[%c0_31, %c0_32] : memref<1x128xf32, #tpu.memory_space<vmem>>, vector<1x128xf32>
    tpu.vector_store %arg5[%c0_31, %c0_32], %65 {strides = array<i32>} : memref<1x128xf32, #tpu.memory_space<vmem>>, vector<1x128xf32>,
    return
  }
  func.func @transform_0(%arg0: i32) -> (i32, i32) {
    %c0_i32 = arith.constant 0 : i32
    %c0_i32_0 = arith.constant 0 : i32
    return %c0_i32, %arg0 : i32, i32
  }
  func.func @transform_1(%arg0: i32) -> (i32, i32) {
    %c0_i32 = arith.constant 0 : i32
    %c0_i32_0 = arith.constant 0 : i32
    %c0_i32_1 = arith.constant 0 : i32
    return %c0_i32, %c0_i32_0 : i32, i32
  }
  func.func @transform_2(%arg0: i32) -> (i32, i32) {
    %c0_i32 = arith.constant 0 : i32
    %c0_i32_0 = arith.constant 0 : i32
    %c0_i32_1 = arith.constant 0 : i32
    return %c0_i32, %c0_i32_0 : i32, i32
  }
  func.func @transform_3(%arg0: i32) -> (i32, i32) {
    %c0_i32 = arith.constant 0 : i32
    %c0_i32_0 = arith.constant 0 : i32
    %c0_i32_1 = arith.constant 0 : i32
    return %c0_i32, %c0_i32_0 : i32, i32
  }
  func.func @transform_4(%arg0: i32) -> (i32, i32) {
    %c0_i32 = arith.constant 0 : i32
    %c0_i32_0 = arith.constant 0 : i32
    return %c0_i32, %arg0 : i32, i32
  }
}

</mosaic_0001>

<bundles_post_ra>
// kernel: tpu_custom_call.1
= control target key start
LH: loop header
LB: loop body
LE: loop exit
PB: predicated region body
PF: predicated region fallthrough
CT: control target
= control target key end

     0   :  { %v1065_v2 = vmov 4   ;;  %v1066_v3 = vmov 1   ;;  %s1536_s0 = inlined_call_operand.vmem [shape: f32[4,128], index: 0, kind: input, shape index: {}]   ;;  %s1537_s1 = inlined_call_operand.vmem [shape: f32[128,9], index: 1, kind: input, shape index: {}]   ;;  %s1538_s2 = inlined_call_operand.vmem [shape: bf16[64,128], index: 2, kind: input, shape index: {}]   ;;  %s1539_s3 = inlined_call_operand.vmem [shape: bf16[32,64], index: 3, kind: input, shape index: {}]   ;;  %s1540_s4 = inlined_call_operand.hbm [shape: f32[1,128], index: 4, kind: output, shape index: {}]  }
   0x1   :  { %v1103_v0 = vld [vmem:[%s1537_s1 + $0x18] sm:$0xff]  ;;  %v1108_v1 = vld [vmem:[%s1537_s1] sm:$0xff]  ;;  %999 = vset.pattern.permute.xlu0 %v1065_v2  ;;  %984 = vset.pattern.permute.xlu1 %v1066_v3  ;;  %v1122_v5 = vld [vmem:[%s1537_s1 + $0x8] sm:$0xff] }
   0x2   :  { %452 = vperm.xlu0 %999, %v1103_v0   ;;  %138 = vperm.xlu1 %984, %v1108_v1   ;;  %v1117_v4 = vld [vmem:[%s1537_s1 + $0x20] sm:$0xff] }
   0x6   :  { %456 = vperm.xlu0 %999, %v1117_v4   ;;  %142 = vperm.xlu1 %984, %v1122_v5  }
   0x7   :  { %9 = vsyncpa [#allocation3], 0  ;;  %v1067_v6 = vmov 3   ;;  %v1068_v7 = vmov 2   ;;  %v1133_v8 = vld [vmem:[%s1537_s1 + $0x10] sm:$0xff]  ;;  %v1069_v9 = vmov 0  }
   0x8   :  { %v1143_v10 = vld [vmem:[%s1537_s1 + $0x48] sm:$0xff]  ;;  %v1150_v11 = vld [vmem:[%s1537_s1 + $0x50] sm:$0xff]  ;;  %v1167_v12 = vld [vmem:[%s1537_s1 + $0x38] sm:$0xff] }
   0x9   :  { %v1172_v13 = vld [vmem:[%s1537_s1 + $0x28] sm:$0xff]  ;;  %v1179_v14 = vld [vmem:[%s1537_s1 + $0x40] sm:$0xff]  ;;  %v1194_v16 = vld [vmem:[%s1537_s1 + $0x70] sm:$0xff] }
   0xa   :  { %1004 = vset.pattern.permute.xlu0 %v1067_v6  ;;  %985 = vset.pattern.permute.xlu1 %v1068_v7  ;;  %v1187_v15 = vld [vmem:[%s1537_s1 + $0x68] sm:$0xff]  ;;  %v1210_v17 = vld [vmem:[%s1537_s1 + $0x78] sm:$0xff]  ;;  %v1215_v18 = vld [vmem:[%s1537_s1 + $0x30] sm:$0xff] }
   0xb   :  { %340 = vperm.xlu0 %1004, %v1108_v1   ;;  %243 = vperm.xlu1 %985, %v1122_v5   ;;  %v1246_v19 = vld [vmem:[%s1537_s1 + $0x60] sm:$0xff]  ;;  %v1269_v24 = vld [vmem:[%s1537_s1 + $0x58] sm:$0xff] }
   0xc   :  { %v1331_v51 = vld [vmem:[%s1536_s0] ss:$0 sm:$0xff]  ;;  %v1337_v53 = vld [vmem:[%s1536_s0 + $0x1] ss:$0 sm:$0xff]  ;;  %v1348_v57 = vld [vmem:[%s1536_s0 + $0x2] ss:$0 sm:$0xff] }
   0xd   :  { %v1357_v62 = vld [vmem:[%s1536_s0 + $0x3] ss:$0 sm:$0xff] }
   0xf   :  { %352 = vperm.xlu0 %1004, %v1103_v0   ;;  %986 = vset.pattern.permute.xlu1 %v1069_v9 }
  0x10   :  { %48 = vperm.xlu1 %986, %v1133_v8  }
  0x13   :  { %356 = vperm.xlu0 %1004, %v1117_v4  }
  0x14   :  { %987 = vset.pattern.permute.xlu1 %v1066_v3 }
  0x15   :  { %146 = vperm.xlu1 %987, %v1133_v8  }
  0x17   :  { %376 = vperm.xlu0 %1004, %v1143_v10  }
  0x19   :  { %150 = vperm.xlu1 %987, %v1103_v0  }
  0x1b   :  { %380 = vperm.xlu0 %1004, %v1150_v11  }
  0x1d   :  { %988 = vset.pattern.permute.xlu1 %v1067_v6 }
  0x1e   :  { %344 = vperm.xlu1 %988, %v1122_v5  }
  0x1f   :  { %1014 = vset.pattern.permute.xlu0 %v1069_v9 }
  0x20   :  { %38 = vperm.xlu0 %1014, %v1108_v1  }
  0x22   :  { %989 = vset.pattern.permute.xlu1 %v1068_v7 }
  0x23   :  { %247 = vperm.xlu1 %989, %v1133_v8  }
  0x24   :  { %43 = vperm.xlu0 %1014, %v1122_v5  }
  0x27   :  { %990 = vset.pattern.permute.xlu1 %v1069_v9 }
  0x28   :  { %53 = vperm.xlu0 %1014, %v1103_v0   ;;  %58 = vperm.xlu1 %990, %v1117_v4  }
  0x2c   :  { %73 = vperm.xlu0 %1014, %v1167_v12   ;;  %63 = vperm.xlu1 %990, %v1172_v13  }
  0x30   :  { %78 = vperm.xlu0 %1014, %v1179_v14   ;;  %991 = vset.pattern.permute.xlu1 %v1066_v3 }
  0x31   :  { %158 = vperm.xlu1 %991, %v1172_v13  }
  0x34   :  { %103 = vperm.xlu0 %1014, %v1187_v15  }
  0x35   :  { %992 = vset.pattern.permute.xlu1 %v1067_v6 }
  0x36   :  { %348 = vperm.xlu1 %992, %v1133_v8  }
  0x38   :  { %108 = vperm.xlu0 %1014, %v1194_v16  }
  0x3a   :  { %993 = vset.pattern.permute.xlu1 %v1065_v2 }
  0x3b   :  { %440 = vperm.xlu1 %993, %v1108_v1  }
  0x3c   :  { %1018 = vset.pattern.permute.xlu0 %v1066_v3 }
  0x3d   :  { %154 = vperm.xlu0 %1018, %v1117_v4  }
  0x3f   :  { %444 = vperm.xlu1 %993, %v1122_v5  }
  0x41   :  { %174 = vperm.xlu0 %1018, %v1143_v10  }
  0x43   :  { %994 = vset.pattern.permute.xlu1 %v1068_v7 }
  0x44   :  { %259 = vperm.xlu1 %994, %v1172_v13  }
  0x45   :  { %178 = vperm.xlu0 %1018, %v1150_v11  }
  0x48   :  { %995 = vset.pattern.permute.xlu1 %v1069_v9 }
  0x49   :  { %198 = vperm.xlu0 %1018, %v1210_v17   ;;  %68 = vperm.xlu1 %995, %v1215_v18  }
  0x4d   :  { %1021 = vset.pattern.permute.xlu0 %v1068_v7  ;;  %996 = vset.pattern.permute.xlu1 %v1066_v3 }
  0x4e   :  { %239 = vperm.xlu0 %1021, %v1108_v1   ;;  %162 = vperm.xlu1 %996, %v1215_v18  }
  0x52   :  { %251 = vperm.xlu0 %1021, %v1103_v0   ;;  %166 = vperm.xlu1 %996, %v1167_v12  }
  0x56   :  { %255 = vperm.xlu0 %1021, %v1117_v4   ;;  %997 = vset.pattern.permute.xlu1 %v1067_v6 }
  0x57   :  { %360 = vperm.xlu1 %997, %v1172_v13  }
  0x5a   :  { %275 = vperm.xlu0 %1021, %v1143_v10  }
  0x5b   :  { %998 = vset.pattern.permute.xlu1 %v1065_v2 }
  0x5c   :  { %448 = vperm.xlu1 %998, %v1133_v8  }
  0x5e   :  { %279 = vperm.xlu0 %1021, %v1150_v11  }
  0x60   :  { %1000 = vset.pattern.permute.xlu1 %v1068_v7 }
  0x61   :  { %263 = vperm.xlu1 %1000, %v1215_v18  }
  0x62   :  { %299 = vperm.xlu0 %1021, %v1210_v17  }
  0x65   :  { %267 = vperm.xlu1 %1000, %v1167_v12  }
  0x66   :  { %1025 = vset.pattern.permute.xlu0 %v1065_v2 }
  0x67   :  { %476 = vperm.xlu0 %1025, %v1143_v10  }
  0x69   :  { %1001 = vset.pattern.permute.xlu1 %v1069_v9 }
  0x6a   :  { %83 = vperm.xlu1 %1001, %v1143_v10  }
  0x6b   :  { %480 = vperm.xlu0 %1025, %v1150_v11  }
  0x6e   :  { %1002 = vset.pattern.permute.xlu1 %v1066_v3 }
  0x6f   :  { %170 = vperm.xlu1 %1002, %v1179_v14   ;;  %488 = vperm.xlu0 %1025, %v1246_v19  }
  0x73   :  { %1003 = vset.pattern.permute.xlu1 %v1067_v6  ;;  %500 = vperm.xlu0 %1025, %v1210_v17  }
  0x74   :  { %364 = vperm.xlu1 %1003, %v1215_v18  }
  0x78   :  { %368 = vperm.xlu1 %1003, %v1167_v12  }
  0x7c   :  { %1005 = vset.pattern.permute.xlu1 %v1065_v2 }
  0x7d   :  { %460 = vperm.xlu1 %1005, %v1172_v13  }
  0x81   :  { %1006 = vset.pattern.permute.xlu1 %v1068_v7  ;;  %v1257_v20 = vpop.permute.xlu1 %138  ;;  %v1259_v21 = vpop.permute.xlu0 %452 }
  0x82   :  { %271 = vperm.xlu1 %1006, %v1179_v14  }
  0x85   :  { %v143_v22 = vpop.permute.xlu1 %142  ;;  %v1262_v23 = vpop.permute.xlu0 %456 }
  0x86   :  { %1007 = vset.pattern.permute.xlu1 %v1069_v9  ;;  %v206_v55 = vmul.f32 %v1337_v53, %v143_v22 }
  0x87   :  { %88 = vperm.xlu1 %1007, %v1150_v11   ;;  %v205_v11 = vmul.f32 %v1337_v53, %v1257_v20 }
  0x8a   :  { %v244_v25 = vpop.permute.xlu1 %243  ;;  %v1271_v26 = vpop.permute.xlu0 %340 }
  0x8b   :  { %93 = vperm.xlu1 %1007, %v1269_v24   ;;  %v307_v59 = vmul.f32 %v1348_v57, %v244_v25 }
  0x8e   :  { %v1274_v27 = vpop.permute.xlu0 %352 }
  0x8f   :  { %1008 = vset.pattern.permute.xlu1 %v1066_v3  ;;  %v1277_v28 = vpop.permute.xlu1 %48 }
  0x90   :  { %182 = vperm.xlu1 %1008, %v1269_v24  }
  0x92   :  { %v1280_v29 = vpop.permute.xlu0 %356 }
  0x94   :  { %1009 = vset.pattern.permute.xlu1 %v1067_v6  ;;  %v1283_v30 = vpop.permute.xlu1 %146 }
  0x95   :  { %372 = vperm.xlu1 %1009, %v1179_v14  }
  0x96   :  { %v1286_v31 = vpop.permute.xlu0 %376 }
  0x98   :  { %v1288_v32 = vpop.permute.xlu1 %150 }
  0x99   :  { %1010 = vset.pattern.permute.xlu1 %v1065_v2  ;;  %v208_v20 = vmul.f32 %v1337_v53, %v1288_v32 }
  0x9a   :  { %464 = vperm.xlu1 %1010, %v1215_v18   ;;  %v1292_v33 = vpop.permute.xlu0 %380 }
  0x9d   :  { %v345_v34 = vpop.permute.xlu1 %344 }
  0x9e   :  { %468 = vperm.xlu1 %1010, %v1167_v12  }
  0x9f   :  { %v39_v35 = vpop.permute.xlu0 %38 }
  0xa0   :  { %v120_v63 = vmul.f32 %v1331_v51, %v39_v35 }
  0xa2   :  { %1011 = vset.pattern.permute.xlu1 %v1068_v7  ;;  %v1296_v36 = vpop.permute.xlu1 %247  ;;  %v221_v22 = vadd.f32 %v205_v11, %v120_v63 }
  0xa3   :  { %v44_v37 = vpop.permute.xlu0 %43  ;;  %283 = vperm.xlu1 %1011, %v1269_v24  }
  0xa4   :  { %v121_v52 = vmul.f32 %v1331_v51, %v44_v37 }
  0xa6   :  { %v222_v58 = vadd.f32 %v206_v55, %v121_v52 }
  0xa7   :  { %v54_v38 = vpop.permute.xlu0 %53  ;;  %1012 = vset.pattern.permute.xlu1 %v1069_v9  ;;  %v1300_v39 = vpop.permute.xlu1 %58 }
  0xa8   :  { %98 = vperm.xlu1 %1012, %v1246_v19   ;;  %v323_v10 = vadd.f32 %v307_v59, %v222_v58  ;;  %v123_v25 = vmul.f32 %v1331_v51, %v54_v38 }
  0xab   :  { %v1303_v40 = vpop.permute.xlu1 %63  ;;  %v74_v41 = vpop.permute.xlu0 %73 }
  0xac   :  { %1013 = vset.pattern.permute.xlu1 %v1066_v3 }
  0xad   :  { %186 = vperm.xlu1 %1013, %v1246_v19  }
  0xaf   :  { %v1307_v42 = vpop.permute.xlu0 %78 }
  0xb0   :  { %v1309_v43 = vpop.permute.xlu1 %158 }
  0xb1   :  { %190 = vperm.xlu1 %1013, %v1187_v15  }
  0xb3   :  { %v1312_v44 = vpop.permute.xlu0 %103 }
  0xb5   :  { %1015 = vset.pattern.permute.xlu1 %v1067_v6  ;;  %v1315_v45 = vpop.permute.xlu1 %348 }
  0xb6   :  { %384 = vperm.xlu1 %1015, %v1269_v24  }
  0xb7   :  { %v1318_v46 = vpop.permute.xlu0 %108 }
  0xba   :  { %1016 = vset.pattern.permute.xlu1 %v1065_v2  ;;  %v441_v47 = vpop.permute.xlu1 %440 }
  0xbb   :  { %472 = vperm.xlu1 %1016, %v1179_v14   ;;  %v408_v14 = vmul.f32 %v1357_v62, %v345_v34 }
  0xbc   :  { %v1322_v48 = vpop.permute.xlu0 %154 }
  0xbd   :  { %v424_v55 = vadd.f32 %v408_v14, %v323_v10  ;;  %v224_v14 = vadd.f32 %v208_v20, %v123_v25  ;;  %v409_v25 = vmul.f32 %v1357_v62, %v1315_v45 }
  0xbe   :  { %v445_v49 = vpop.permute.xlu1 %444 }
  0xbf   :  { %1017 = vset.pattern.permute.xlu1 %v1068_v7  ;;  %v504_v34 = vadd.f32 %v445_v49, %v424_v55  ;;  %v308_v49 = vmul.f32 %v1348_v57, %v1296_v36 }
  0xc0   :  { %287 = vperm.xlu1 %1017, %v1246_v19   ;;  %v1326_v50 = vpop.permute.xlu0 %174 }
  0xc1   :  { %vm520_vm0 = vcmp.gt.f32.partialorder %v504_v34, 0.0 }
  0xc3   :  { %v1339_v54 = vpop.permute.xlu1 %259 }
  0xc4   :  { %291 = vperm.xlu1 %1017, %v1187_v15   ;;  %v1343_v56 = vpop.permute.xlu0 %178 }
  0xc8   :  { %1019 = vset.pattern.permute.xlu1 %v1069_v9  ;;  %v69_v60 = vpop.permute.xlu1 %68  ;;  %v1352_v61 = vpop.permute.xlu0 %198  ;;  %v407_v9 = vmul.f32 %v1357_v62, %v1271_v26  ;;  %v127_v26 = vmul.f32 %v1331_v51, %v74_v41  ;;  %v122_v41 = vmul.f32 %v1331_v51, %v1277_v28 }
  0xc9   :  { %113 = vperm.xlu1 %1019, %v1210_v17   ;;  %v126_v35 = vmul.f32 %v1331_v51, %v69_v60  ;;  %v207_v60 = vmul.f32 %v1337_v53, %v1283_v30 }
  0xcd   :  { %v240_v37 = vpop.permute.xlu0 %239  ;;  %1020 = vset.pattern.permute.xlu1 %v1066_v3  ;;  %v163_v52 = vpop.permute.xlu1 %162  ;;  %v410_v3 = vmul.f32 %v1357_v62, %v1274_v27  ;;  %v536_v27 = vmul.f32 0.01, %v504_v34 }
  0xce   :  { %v306_v58 = vmul.f32 %v1348_v57, %v240_v37  ;;  %v211_v59 = vmul.f32 %v1337_v53, %v163_v52  ;;  %194 = vperm.xlu1 %1020, %v1194_v16  }
  0xcf   :  { %v552_v20 = vsel %vm520_vm0, %v504_v34, %v536_v27  ;;  %v416_v27 = vmul.f32 %v1357_v62, %v1286_v31  ;;  %v411_v31 = vmul.f32 %v1357_v62, %v1280_v29  ;;  %vm786_vm0 = vcmask 523264  }
  0xd0   :  { %v322_v38 = vadd.f32 %v306_v58, %v221_v22  ;;  %v1375_v63 = vadd.f32 %v211_v59, %v126_v35 }
  0xd1   :  { %v252_v10 = vpop.permute.xlu0 %251  ;;  %v167_v11 = vpop.permute.xlu1 %166 }
  0xd2   :  { %v423_v37 = vadd.f32 %v407_v9, %v322_v38  ;;  %v309_v52 = vmul.f32 %v1348_v57, %v252_v10  ;;  %v212_v32 = vmul.f32 %v1337_v53, %v167_v11  ;;  %1022 = vset.pattern.permute.xlu1 %v1067_v6  ;;  %v223_v9 = vadd.f32 %v207_v60, %v122_v41 }
  0xd3   :  { %388 = vperm.xlu1 %1022, %v1246_v19  }
  0xd4   :  { %v503_v30 = vadd.f32 %v441_v47, %v423_v37  ;;  %v325_v22 = vadd.f32 %v309_v52, %v224_v14  ;;  %v1389_v55 = vadd.f32 %v212_v32, %v127_v26  ;;  %v324_v28 = vadd.f32 %v308_v49, %v223_v9 }
  0xd5   :  { %v256_v37 = vpop.permute.xlu0 %255  ;;  %v209_v49 = vmul.f32 %v1337_v53, %v1322_v48 }
  0xd6   :  { %v426_v35 = vadd.f32 %v410_v3, %v325_v22  ;;  %v361_v58 = vpop.permute.xlu1 %360  ;;  %vm519_vm1 = vcmp.gt.f32.partialorder %v503_v30, 0.0  ;;  %v535_v59 = vmul.f32 0.01, %v503_v30  ;;  %v425_v38 = vadd.f32 %v409_v25, %v324_v28 }
  0xd7   :  { %392 = vperm.xlu1 %1022, %v1187_v15   ;;  %v310_v22 = vmul.f32 %v1348_v57, %v256_v37  ;;  %v125_v28 = vmul.f32 %v1331_v51, %v1303_v40 }
  0xd8   :  { %v506_v36 = vadd.f32 %v1259_v21, %v426_v35  ;;  %v551_v19 = vsel %vm519_vm1, %v503_v30, %v535_v59  ;;  %v124_v30 = vmul.f32 %v1331_v51, %v1300_v39 }
  0xd9   :  { %v575_v47 = vpack.c.bf16 %v552_v20, %v551_v19  ;;  %v412_v20 = vmul.f32 %v1357_v62, %v361_v58 }
  0xda   :  { %v538_v45 = vmul.f32 0.01, %v506_v36  ;;  %vm522_vm2 = vcmp.gt.f32.partialorder %v506_v36, 0.0 }
  0xdb   :  { %1023 = vset.pattern.permute.xlu1 %v1065_v2  ;;  %938 = vmatprep.subr.bf16.mxu0 %v575_v47  ;;  %v449_v26 = vpop.permute.xlu1 %448 }
  0xdc   :  { %v505_v60 = vadd.f32 %v449_v26, %v425_v38  ;;  %484 = vperm.xlu1 %1023, %v1269_v24   ;;  %939 = vmatpush3.bf16.msra.mxu0 %v575_v47  ;;  %v554_v34 = vsel %vm522_vm2, %v506_v36, %v538_v45  ;;  %v214_v24 = vmul.f32 %v1337_v53, %v1326_v50 }
  0xdd   :  { %v128_v50 = vmul.f32 %v1331_v51, %v1307_v42  ;;  %v210_v42 = vmul.f32 %v1337_v53, %v1309_v43 }
  0xde   :  { %vm521_vm3 = vcmp.gt.f32.partialorder %v505_v60, 0.0  ;;  %v537_v3 = vmul.f32 0.01, %v505_v60 }
  0xdf   :  { %v226_v19 = vadd.f32 %v210_v42, %v125_v28 }
  0xe0   :  { %1024 = vset.pattern.permute.xlu1 %v1068_v7  ;;  %v1398_v10 = vpop.permute.xlu1 %263  ;;  %v553_v21 = vsel %vm521_vm3, %v505_v60, %v537_v3  ;;  %v276_v7 = vpop.permute.xlu0 %275 }
  0xe1   :  { %295 = vperm.xlu1 %1024, %v1194_v16   ;;  %v576_v11 = vpack.c.bf16 %v554_v34, %v553_v21  ;;  %v315_v32 = vmul.f32 %v1348_v57, %v276_v7  ;;  %v1070_v7 = vmov 5  }
  0xe2   :  { %1029 = vset.pattern.permute.xlu0 %v1070_v7 }
  0xe3   :  { %940 = vmatprep.subr.bf16.mxu0 %v576_v11  ;;  %598 = vperm.xlu0 %1029, %v1122_v5  }
  0xe4   :  { %941 = vmatpush3.bf16.msra.mxu0 %v576_v11  ;;  %v1401_v14 = vpop.permute.xlu1 %267  ;;  %v280_v34 = vpop.permute.xlu0 %279 }
  0xe5   :  { %1026 = vset.pattern.permute.xlu1 %v1067_v6  ;;  %v316_v37 = vmul.f32 %v1348_v57, %v280_v34 }
  0xe6   :  { %396 = vperm.xlu1 %1026, %v1194_v16  }
  0xe7   :  { %613 = vperm.xlu0 %1029, %v1117_v4  }
  0xe9   :  { %v84_v52 = vpop.permute.xlu1 %83 }
  0xea   :  { %v129_v41 = vmul.f32 %v1331_v51, %v84_v52  ;;  %400 = vperm.xlu1 %1026, %v1210_v17   ;;  %v225_v17 = vadd.f32 %v209_v49, %v124_v30  ;;  %v417_v52 = vmul.f32 %v1357_v62, %v1292_v33 }
  0xeb   :  { %623 = vperm.xlu0 %1029, %v1215_v18  }
  0xec   :  { %v230_v6 = vadd.f32 %v214_v24, %v129_v41  ;;  %v326_v39 = vadd.f32 %v310_v22, %v225_v17 }
  0xee   :  { %1027 = vset.pattern.permute.xlu1 %v1065_v2  ;;  %v171_v9 = vpop.permute.xlu1 %170  ;;  %v331_v25 = vadd.f32 %v315_v32, %v230_v6  ;;  %v427_v36 = vadd.f32 %v411_v31, %v326_v39 }
  0xef   :  { %v213_v35 = vmul.f32 %v1337_v53, %v171_v9  ;;  %492 = vperm.xlu1 %1027, %v1187_v15   ;;  %v311_v15 = vmul.f32 %v1348_v57, %v1339_v54 }
  0xf0   :  { %v1422_v48 = vadd.f32 %v416_v27, %v331_v25  ;;  %v507_v38 = vadd.f32 %v1262_v23, %v427_v36  ;;  %v215_v23 = vmul.f32 %v1337_v53, %v1343_v56 }
  0xf1   :  { %v1426_v59 = vadd.f32 %v213_v35, %v128_v50  ;;  %v327_v47 = vadd.f32 %v311_v15, %v226_v19  ;;  %v313_v50 = vmul.f32 %v1348_v57, %v1401_v14 }
  0xf2   :  { %v539_v45 = vmul.f32 0.01, %v507_v38  ;;  %vm523_vm4 = vcmp.gt.f32.partialorder %v507_v38, 0.0 }
  0xf3   :  { %496 = vperm.xlu1 %1027, %v1194_v16   ;;  %v365_v2 = vpop.permute.xlu1 %364  ;;  %v428_v26 = vadd.f32 %v412_v20, %v327_v47  ;;  %v1035_v16 = vld [vmem:[%s1538_s2] sm:$0xff]   ;;  %v329_v18 = vadd.f32 %v313_v50, %v1389_v55 }
  0xf4   :  { %954 = vmatprep.mubr.bf16.mxu0 %v1035_v16  ;;  %v555_v3 = vsel %vm523_vm4, %v507_v38, %v539_v45  ;;  %v413_v33 = vmul.f32 %v1357_v62, %v365_v2 }
  0xf7   :  { %v369_v29 = vpop.permute.xlu1 %368  ;;  %1028 = vset.pattern.permute.xlu1 %v1070_v7 }
  0xf8   :  { %593 = vperm.xlu1 %1028, %v1108_v1   ;;  %v312_v1 = vmul.f32 %v1348_v57, %v1398_v10  ;;  %v414_v22 = vmul.f32 %v1357_v62, %v369_v29 }
  0xfa   :  { %v328_v4 = vadd.f32 %v312_v1, %v1375_v63  ;;  %v430_v25 = vadd.f32 %v414_v22, %v329_v18 }
  0xfc   :  { %v461_v43 = vpop.permute.xlu1 %460  ;;  %603 = vperm.xlu1 %1028, %v1133_v8   ;;  %v429_v9 = vadd.f32 %v413_v33, %v328_v4 }
  0xfd   :  { %v508_v60 = vadd.f32 %v461_v43, %v428_v26 }
  0xff   :  { %vm524_vm5 = vcmp.gt.f32.partialorder %v508_v60, 0.0  ;;  %v540_v40 = vmul.f32 0.01, %v508_v60 }
 0x100   :  { %608 = vperm.xlu1 %1028, %v1103_v0  }
 0x101   :  { %v272_v54 = vpop.permute.xlu1 %271  ;;  %v556_v21 = vsel %vm524_vm5, %v508_v60, %v540_v40 }
 0x102   :  { %v577_v58 = vpack.c.bf16 %v556_v21, %v555_v3  ;;  %v314_v55 = vmul.f32 %v1348_v57, %v272_v54 }
 0x104   :  { %942 = vmatprep.subr.bf16.mxu0 %v577_v58  ;;  %618 = vperm.xlu1 %1028, %v1172_v13   ;;  %v330_v47 = vadd.f32 %v314_v55, %v1426_v59 }
 0x105   :  { %943 = vmatpush3.bf16.msra.mxu0 %v577_v58 }
 0x106   :  { %v89_v11 = vpop.permute.xlu1 %88 }
 0x107   :  { %v130_v24 = vmul.f32 %v1331_v51, %v89_v11 }
 0x108   :  { %628 = vperm.xlu1 %1028, %v1167_v12   ;;  %v300_v12 = vpop.permute.xlu0 %299 }
 0x109   :  { %v231_v32 = vadd.f32 %v215_v23, %v130_v24 }
 0x10a   :  { %v94_v41 = vpop.permute.xlu1 %93 }
 0x10b   :  { %v332_v56 = vadd.f32 %v316_v37, %v231_v32  ;;  %v131_v6 = vmul.f32 %v1331_v51, %v94_v41 }
 0x10c   :  { %v477_v36 = vpop.permute.xlu0 %476 }
 0x10d   :  { %v1450_v49 = vadd.f32 %v417_v52, %v332_v56  ;;  %v512_v29 = vadd.f32 %v477_v36, %v1422_v48 }
 0x10f   :  { %v183_v27 = vpop.permute.xlu1 %182  ;;  %v544_v16 = vmul.f32 0.01, %v512_v29  ;;  %vm528_vm8 = vcmp.gt.f32.partialorder %v512_v29, 0.0 }
 0x110   :  { %v216_v30 = vmul.f32 %v1337_v53, %v183_v27  ;;  %v481_v59 = vpop.permute.xlu0 %480 }
 0x111   :  { %v560_v3 = vsel %vm528_vm8, %v512_v29, %v544_v16  ;;  %v513_v24 = vadd.f32 %v481_v59, %v1450_v49  ;;  %v1038_v59 = vld [vmem:[%s1538_s2 + $0x18] sm:$0xff]  }
 0x112   :  { %v232_v5 = vadd.f32 %v216_v30, %v131_v6 }
 0x113   :  { %v545_v41 = vmul.f32 0.01, %v513_v24  ;;  %vm529_vm10 = vcmp.gt.f32.partialorder %v513_v24, 0.0 }
 0x114   :  { %v373_v8 = vpop.permute.xlu1 %372 }
 0x115   :  { %v415_v19 = vmul.f32 %v1357_v62, %v373_v8  ;;  %v561_v1 = vsel %vm529_vm10, %v513_v24, %v545_v41  ;;  %v752_v24 = vld [vmem:[%s1537_s1] sm:$0xff]  ;;  %v1072_v41 = vmov 7  }
 0x117   :  { %v431_v38 = vadd.f32 %v415_v19, %v330_v47 }
 0x119   :  { %v465_v0 = vpop.permute.xlu1 %464 }
 0x11a   :  { %v509_v10 = vadd.f32 %v465_v0, %v429_v9  ;;  %v220_v9 = vmul.f32 %v1337_v53, %v1352_v61 }
 0x11c   :  { %v541_v35 = vmul.f32 0.01, %v509_v10  ;;  %vm525_vm6 = vcmp.gt.f32.partialorder %v509_v10, 0.0 }
 0x11d   :  { %v469_v17 = vpop.permute.xlu1 %468 }
 0x11e   :  { %v510_v31 = vadd.f32 %v469_v17, %v430_v25  ;;  %v557_v39 = vsel %vm525_vm6, %v509_v10, %v541_v35  ;;  %v321_v25 = vmul.f32 %v1348_v57, %v300_v12  ;;  %v133_v35 = vmul.f32 %v1331_v51, %v1312_v44 }
 0x11f   :  { %v134_v12 = vmul.f32 %v1331_v51, %v1318_v46 }
 0x120   :  { %vm526_vm7 = vcmp.gt.f32.partialorder %v510_v31, 0.0  ;;  %v542_v13 = vmul.f32 0.01, %v510_v31 }
 0x122   :  { %v284_v63 = vpop.permute.xlu1 %283  ;;  %v558_v42 = vsel %vm526_vm7, %v510_v31, %v542_v13 }
 0x123   :  { %v578_v14 = vpack.c.bf16 %v558_v42, %v557_v39  ;;  %v317_v48 = vmul.f32 %v1348_v57, %v284_v63  ;;  %v489_v63 = vpop.permute.xlu0 %488 }
 0x125   :  { %944 = vmatprep.subr.bf16.mxu0 %v578_v14  ;;  %v333_v7 = vadd.f32 %v317_v48, %v232_v5  ;;  %v1037_v48 = vld [vmem:[%s1538_s2 + $0x10] sm:$0xff]  }
 0x126   :  { %945 = vmatpush3.bf16.msra.mxu0 %v578_v14 }
 0x127   :  { %v99_v2 = vpop.permute.xlu1 %98  ;;  %v501_v47 = vpop.permute.xlu0 %500 }
 0x128   :  { %v132_v8 = vmul.f32 %v1331_v51, %v99_v2 }
 0x12c   :  { %v187_v28 = vpop.permute.xlu1 %186 }
 0x12d   :  { %v217_v6 = vmul.f32 %v1337_v53, %v187_v28 }
 0x12f   :  { %v233_v5 = vadd.f32 %v217_v6, %v132_v8 }
 0x130   :  { %v191_v15 = vpop.permute.xlu1 %190 }
 0x131   :  { %v218_v0 = vmul.f32 %v1337_v53, %v191_v15 }
 0x133   :  { %v234_v39 = vadd.f32 %v218_v0, %v133_v35 }
 0x135   :  { %v385_v20 = vpop.permute.xlu1 %384 }
 0x136   :  { %v418_v11 = vmul.f32 %v1357_v62, %v385_v20 }
 0x138   :  { %v434_v52 = vadd.f32 %v418_v11, %v333_v7  ;;  %v1039_v11 = vld [vmem:[%s1539_s3] sm:$0xff]   ;;  %v1071_v7 = vmov 6  }
 0x139   :  { %970 = vmatprep.mubr.msk.bf16.mxu1 %vm786_vm0, %v1039_v11  ;;  %1031 = vset.pattern.permute.xlu1 %v1071_v7 }
 0x13a   :  { %v473_v26 = vpop.permute.xlu1 %472  ;;  %1030 = vset.pattern.permute.xlu0 %v1071_v7 }
 0x13b   :  { %v511_v43 = vadd.f32 %v473_v26, %v431_v38  ;;  %758 = vperm.xlu0 %1030, %v752_v24  }
 0x13d   :  { %vm527_vm9 = vcmp.gt.f32.partialorder %v511_v43, 0.0  ;;  %v543_v60 = vmul.f32 0.01, %v511_v43 }
 0x13f   :  { %v288_v45 = vpop.permute.xlu1 %287  ;;  %v559_v40 = vsel %vm527_vm9, %v511_v43, %v543_v60 }
 0x140   :  { %v579_v21 = vpack.c.bf16 %v560_v3, %v559_v40  ;;  %v318_v4 = vmul.f32 %v1348_v57, %v288_v45 }
 0x142   :  { %946 = vmatprep.subr.bf16.mxu0 %v579_v21  ;;  %v334_v18 = vadd.f32 %v318_v4, %v233_v5 }
 0x143   :  { %947 = vmatpush3.bf16.msra.mxu0 %v579_v21  ;;  %v292_v54 = vpop.permute.xlu1 %291 }
 0x144   :  { %v319_v31 = vmul.f32 %v1348_v57, %v292_v54 }
 0x146   :  { %v335_v15 = vadd.f32 %v319_v31, %v234_v39 }
 0x148   :  { %v114_v58 = vpop.permute.xlu1 %113 }
 0x149   :  { %v135_v49 = vmul.f32 %v1331_v51, %v114_v58 }
 0x14b   :  { %v236_v17 = vadd.f32 %v220_v9, %v135_v49 }
 0x14d   :  { %v195_v23 = vpop.permute.xlu1 %194  ;;  %v337_v2 = vadd.f32 %v321_v25, %v236_v17 }
 0x14e   :  { %v219_v42 = vmul.f32 %v1337_v53, %v195_v23 }
 0x150   :  { %v235_v19 = vadd.f32 %v219_v42, %v134_v12 }
 0x152   :  { %v389_v34 = vpop.permute.xlu1 %388 }
 0x153   :  { %v419_v22 = vmul.f32 %v1357_v62, %v389_v34  ;;  %v1036_v34 = vld [vmem:[%s1538_s2 + $0x8] sm:$0xff]  }
 0x155   :  { %v435_v13 = vadd.f32 %v419_v22, %v334_v18 }
 0x156   :  { %v393_v37 = vpop.permute.xlu1 %392 }
 0x157   :  { %v420_v61 = vmul.f32 %v1357_v62, %v393_v37  ;;  %v515_v55 = vadd.f32 %v489_v63, %v435_v13  ;;  %v753_v37 = vld [vmem:[%s1537_s1 + $0x8] sm:$0xff] }
 0x158   :  { %763 = vperm.xlu1 %1031, %v753_v37  }
 0x159   :  { %v436_v29 = vadd.f32 %v420_v61, %v335_v15  ;;  %v547_v38 = vmul.f32 0.01, %v515_v55  ;;  %vm531_vm12 = vcmp.gt.f32.partialorder %v515_v55, 0.0 }
 0x15b   :  { %v485_v32 = vpop.permute.xlu1 %484  ;;  %v563_v3 = vsel %vm531_vm12, %v515_v55, %v547_v38 }
 0x15c   :  { %v514_v56 = vadd.f32 %v485_v32, %v434_v52  ;;  %v754_v52 = vld [vmem:[%s1537_s1 + $0x10] sm:$0xff]  ;;  %v755_v32 = vld [vmem:[%s1537_s1 + $0x18] sm:$0xff] }
 0x15d   :  { %768 = vperm.xlu1 %1031, %v754_v52   ;;  %773 = vperm.xlu0 %1030, %v755_v32  }
 0x15e   :  { %vm530_vm11 = vcmp.gt.f32.partialorder %v514_v56, 0.0  ;;  %v546_v27 = vmul.f32 0.01, %v514_v56 }
 0x160   :  { %v296_v30 = vpop.permute.xlu1 %295  ;;  %v562_v33 = vsel %vm530_vm11, %v514_v56, %v546_v27  ;;  %v854_v56 = vld [vmem:[%s1537_s1] sm:$0x1]  ;;  %v1073_v27 = vmov 8  }
 0x161   :  { %v580_v50 = vpack.c.bf16 %v562_v33, %v561_v1  ;;  %v320_v44 = vmul.f32 %v1348_v57, %v296_v30  ;;  %1032 = vset.pattern.permute.xlu1 %v1072_v41  ;;  %1033 = vset.pattern.permute.xlu0 %v1072_v41 }
 0x162   :  { %856 = vperm.xlu1 %1032, %v752_v24   ;;  %860 = vperm.xlu0 %1033, %v753_v37   ;;  %v599_v1 = vpop.permute.xlu0 %598 }
 0x163   :  { %948 = vmatprep.subr.bf16.mxu0 %v580_v50  ;;  %v336_v26 = vadd.f32 %v320_v44, %v235_v19 }
 0x164   :  { %949 = vmatpush3.bf16.msra.mxu0 %v580_v50 }
 0x165   :  { %v397_v10 = vpop.permute.xlu1 %396 }
 0x166   :  { %v421_v20 = vmul.f32 %v1357_v62, %v397_v10  ;;  %864 = vperm.xlu1 %1032, %v754_v52   ;;  %1034 = vset.pattern.permute.xlu0 %v1073_v27  ;;  %v614_v49 = vpop.permute.xlu0 %613 }
 0x167   :  { %886 = vperm.xlu0 %1034, %v854_v56  }
 0x168   :  { %v437_v45 = vadd.f32 %v421_v20, %v336_v26 }
 0x169   :  { %v401_v14 = vpop.permute.xlu1 %400 }
 0x16a   :  { %v422_v28 = vmul.f32 %v1357_v62, %v401_v14  ;;  %868 = vperm.xlu1 %1032, %v755_v32   ;;  %v624_v39 = vpop.permute.xlu0 %623 }
 0x16c   :  { %v438_v36 = vadd.f32 %v422_v28, %v337_v2 }
 0x16e   :  { %v493_v53 = vpop.permute.xlu1 %492  ;;  %v518_v16 = vadd.f32 %v501_v47, %v438_v36 }
 0x16f   :  { %v516_v43 = vadd.f32 %v493_v53, %v436_v29 }
 0x170   :  { %v550_v51 = vmul.f32 0.01, %v518_v16  ;;  %vm534_vm14 = vcmp.gt.f32.partialorder %v518_v16, 0.0 }
 0x171   :  { %vm532_vm13 = vcmp.gt.f32.partialorder %v516_v43, 0.0  ;;  %v548_v60 = vmul.f32 0.01, %v516_v43 }
 0x172   :  { %v497_v46 = vpop.permute.xlu1 %496  ;;  %v566_v58 = vsel %vm534_vm14, %v518_v16, %v550_v51 }
 0x173   :  { %v517_v40 = vadd.f32 %v497_v46, %v437_v45  ;;  %v564_v57 = vsel %vm532_vm13, %v516_v43, %v548_v60 }
 0x174   :  { %v581_v21 = vpack.c.bf16 %v564_v57, %v563_v3 }
 0x175   :  { %vm533_vm15 = vcmp.gt.f32.partialorder %v517_v40, 0.0  ;;  %v549_v62 = vmul.f32 0.01, %v517_v40 }
 0x176   :  { %950 = vmatprep.subr.bf16.mxu0 %v581_v21 }
 0x177   :  { %951 = vmatpush3.bf16.msra.mxu0 %v581_v21  ;;  %v565_v54 = vsel %vm533_vm15, %v517_v40, %v549_v62  ;;  %v594_v6 = vpop.permute.xlu1 %593  ;;  %v1040_v40 = vld [vmem:[%s1539_s3 + $0x8] sm:$0xff]   ;;  %s1074_s3 = smov [#allocation2]  }
 0x178   :  { %v582_v23 = vpack.c.bf16 %v566_v58, %v565_v54  ;;  %s900_s22 = sshll.u32 %s1074_s3, 4  ;;  %s901_s22 = int_to_ptr.vmem [resolvable:$true] %s900_s22 }
 0x179   :  { %s1041_s23 = scalar_lea.vmem %s901_s22, 16  ;;  %s1045_s24 = scalar_lea.vmem %s901_s22, 32 }
 0x17a   :  { %952 = vmatprep.subr.bf16.mxu0 %v582_v23  ;;  %p1042_p0 = scmp.ne.s32.totalorder %s901_s22, %s1041_s23  ;;  %p1046_p1 = scmp.lt.s32.totalorder %s901_s22, %s901_s22 }
 0x17b   :  { %953 = vmatpush3.bf16.msra.mxu0 %v582_v23  ;;  %v604_v30 = vpop.permute.xlu1 %603  ;;  %p1047_p2 = scmp.lt.s32.totalorder %s1045_s24, %s1041_s23 }
 0x17d   :  { %p1048_p3 = por %p1047_p2, %p1046_p1 }
 0x17e   :  { %955 = vmatmul.mubr.bf16.vlgmr.msra.gmra.mrb[0].mxu0 %v1036_v34 }
 0x17f   :  { %958 = vmatprep.mubr.bf16.mxu0 %v1037_v48  ;;  %v609_v33 = vpop.permute.xlu1 %608  ;;  %p1049_p4 = pnand %p1048_p3, %p1042_p0 }
 0x183   :  { %v619_v10 = vpop.permute.xlu1 %618 }
 0x186   :  { %959 = vmatmul.mubr.bf16.gmra.mrb[4].mxu0 %v1038_v59 }
 0x187   :  { %v629_v55 = vpop.permute.xlu1 %628 }
 0x1ba   :  { %v759_v21 = vpop.permute.xlu0 %758 }
 0x1d7   :  { %v764_v3 = vpop.permute.xlu1 %763 }
 0x1dc   :  { %v769_v57 = vpop.permute.xlu1 %768  ;;  %v774_v34 = vpop.permute.xlu0 %773 }
 0x1e1   :  { %v857_v62 = vpop.permute.xlu1 %856 }
 0x1e5   :  { %v865_v32 = vpop.permute.xlu1 %864 }
 0x251   :  { %v956_v8 = vpop.f32.mrb[0].mxu0 }
 0x252   :  { %v698_v4 = vadd.f32 %v956_v8, %v604_v30  ;;  %v689_v50 = vpop.f32.mrb[1].mxu0 }
 0x253   :  { %v690_v5 = vadd.f32 %v689_v50, %v594_v6  ;;  %v957_v22 = vpop.f32.mrb[2].mxu0  ;;  %v861_v6 = vpop.permute.xlu0 %860 }
 0x254   :  { %v730_v9 = vmul.f32 0.01, %v698_v4  ;;  %v701_v0 = vadd.f32 %v957_v22, %v609_v33  ;;  %v692_v18 = vpop.f32.mrb[3].mxu0  ;;  %vm722_vm1 = vcmp.gt.f32.partialorder %v698_v4, 0.0 }
 0x255   :  { %v728_v25 = vmul.f32 0.01, %v690_v5  ;;  %v693_v17 = vadd.f32 %v692_v18, %v599_v1  ;;  %vm720_vm3 = vcmp.gt.f32.partialorder %v690_v5, 0.0 }
 0x256   :  { %vm723_vm2 = vcmp.gt.f32.partialorder %v701_v0, 0.0  ;;  %v731_v35 = vmul.f32 0.01, %v701_v0  ;;  %v738_v13 = vsel %vm722_vm1, %v698_v4, %v730_v9 }
 0x257   :  { %v729_v31 = vmul.f32 0.01, %v693_v17  ;;  %vm721_vm4 = vcmp.gt.f32.partialorder %v693_v17, 0.0  ;;  %v736_v61 = vsel %vm720_vm3, %v690_v5, %v728_v25  ;;  %v869_v5 = vpop.permute.xlu1 %868 }
 0x258   :  { %v739_v63 = vsel %vm723_vm2, %v701_v0, %v731_v35 }
 0x259   :  { %v960_v42 = vpop.f32.mrb[4].mxu0  ;;  %v737_v14 = vsel %vm721_vm4, %v693_v17, %v729_v31  ;;  %v749_v2 = vpack.c.bf16 %v739_v63, %v738_v13  ;;  %v887_v31 = vpop.permute.xlu0 %886 }
 0x25a   :  { %v714_v28 = vadd.f32 %v960_v42, %v624_v39  ;;  %v705_v12 = vpop.f32.mrb[5].mxu0  ;;  %v748_v15 = vpack.c.bf16 %v737_v14, %v736_v61 }
 0x25b   :  { %v706_v44 = vadd.f32 %v705_v12, %v614_v49  ;;  %v961_v36 = vpop.f32.mrb[6].mxu0 }
 0x25c   :  { %v734_v19 = vmul.f32 0.01, %v714_v28  ;;  %v717_v20 = vadd.f32 %v961_v36, %v629_v55  ;;  %v708_v29 = vpop.f32.mrb[7].mxu0  ;;  %962 = vmatprep.subr.bf16.mxu1 %v748_v15  ;;  %vm726_vm5 = vcmp.gt.f32.partialorder %v714_v28, 0.0 }
 0x25d   :  { %v732_v47 = vmul.f32 0.01, %v706_v44  ;;  %v709_v53 = vadd.f32 %v708_v29, %v619_v10  ;;  %963 = vmatpush3.bf16.msra.mxu1 %v748_v15  ;;  %vm724_vm6 = vcmp.gt.f32.partialorder %v706_v44, 0.0 }
 0x25e   :  { %vm727_vm7 = vcmp.gt.f32.partialorder %v717_v20, 0.0  ;;  %v735_v38 = vmul.f32 0.01, %v717_v20  ;;  %964 = vmatprep.subr.bf16.mxu1 %v749_v2  ;;  %v742_v16 = vsel %vm726_vm5, %v714_v28, %v734_v19 }
 0x25f   :  { %vm725_vm8 = vcmp.gt.f32.partialorder %v709_v53, 0.0  ;;  %v733_v26 = vmul.f32 0.01, %v709_v53  ;;  %v740_v60 = vsel %vm724_vm6, %v706_v44, %v732_v47 }
 0x260   :  { %v743_v43 = vsel %vm727_vm7, %v717_v20, %v735_v38 }
 0x261   :  { %965 = vmatpush3.bf16.msra.mxu1 %v749_v2  ;;  %v741_v45 = vsel %vm725_vm8, %v709_v53, %v733_v26  ;;  %v751_v46 = vpack.c.bf16 %v743_v43, %v742_v16 }
 0x262   :  { %v750_v51 = vpack.c.bf16 %v741_v45, %v740_v60 }
 0x264   :  { %966 = vmatprep.subr.bf16.mxu1 %v750_v51 }
 0x265   :  { %967 = vmatpush3.bf16.msra.mxu1 %v750_v51 }
 0x266   :  { %968 = vmatprep.subr.bf16.mxu1 %v751_v46 }
 0x269   :  { %969 = vmatpush3.bf16.msra.mxu1 %v751_v46 }
 0x26c   :  { %971 = vmatmul.mubr.msk.bf16.vlgmr.msra.gmra.mrb[0].mxu1 %vm786_vm0, %v1040_v40 }
 0x33f   :  { %v972_v54 = vpop.f32.mrb[0].mxu1 }
 0x340   :  { %v836_v58 = vadd.f32 %v972_v54, %v769_v57  ;;  %v827_v23 = vpop.f32.mrb[1].mxu1 }
 0x341   :  { %v828_v48 = vadd.f32 %v827_v23, %v759_v21  ;;  %v973_v59 = vpop.f32.mrb[2].mxu1 }
 0x342   :  { %v839_v11 = vadd.f32 %v973_v59, %v774_v34  ;;  %v830_v37 = vpop.f32.mrb[3].mxu1  ;;  %v848_v24 = vmul.f32 0.01, %v836_v58  ;;  %vm844_vm10 = vcmp.gt.f32.partialorder %v836_v58, 0.0 }
 0x343   :  { %vm842_vm9 = vcmp.gt.f32.partialorder %v828_v48, 0.0  ;;  %v846_v7 = vmul.f32 0.01, %v828_v48  ;;  %v831_v52 = vadd.f32 %v830_v37, %v764_v3 }
 0x344   :  { %v849_v56 = vmul.f32 0.01, %v839_v11  ;;  %vm845_vm12 = vcmp.gt.f32.partialorder %v839_v11, 0.0  ;;  %v852_v30 = vsel %vm844_vm10, %v836_v58, %v848_v24 }
 0x345   :  { %v850_v41 = vsel %vm842_vm9, %v828_v48, %v846_v7  ;;  %v847_v27 = vmul.f32 0.01, %v831_v52  ;;  %vm843_vm11 = vcmp.gt.f32.partialorder %v831_v52, 0.0  ;;  %v873_v50 = vmul.f32 %v865_v32, %v852_v30 }
 0x346   :  { %v871_v33 = vmul.f32 %v857_v62, %v850_v41  ;;  %v853_v4 = vsel %vm845_vm12, %v839_v11, %v849_v56 }
 0x347   :  { %v851_v1 = vsel %vm843_vm11, %v831_v52, %v847_v27  ;;  %v874_v22 = vmul.f32 %v869_v5, %v853_v4 }
 0x348   :  { %v872_v8 = vmul.f32 %v861_v6, %v851_v1 }
 0x34a   :  { %v875_v49 = vadd.f32 %v872_v8, %v871_v33 }
 0x34c   :  { %v876_v9 = vadd.f32 %v875_v49, %v873_v50 }
 0x34e   :  { %v877_v0 = vadd.f32 %v876_v9, %v874_v22 }
 0x350   :  { %v878_v18 = vrot.slane %v877_v0, 4 }
 0x352   :  { %v879_v10 = vadd.f32 %v878_v18, %v877_v0 }
 0x354   :  { %v880_v25 = vrot.slane %v879_v10, 2 }
 0x356   :  { %v881_v17 = vadd.f32 %v880_v25, %v879_v10 }
 0x358   :  { %v882_v35 = vrot.slane %v881_v17, 1 }
 0x35a   :  { %v883_v13 = vadd.f32 %v882_v35, %v881_v17 }
 0x35c   :  { %v889_v63 = vadd.f32 %v887_v31, %v883_v13 }
 0x35e   :  { %v891_v39 = vmul.f32 0.01, %v889_v63  ;;  %vm890_vm13 = vcmp.gt.f32.partialorder %v889_v63, 0.0 }
 0x360   :  { %v892_v42 = vsel %vm890_vm13, %v889_v63, %v891_v39 }
 0x361   :  { %893 = vst [vmem:[#allocation2] sm:$0x1] %v892_v42 }
 0x362   :  { %1052 = shalt.err (!%p1049_p4)
}
 0x363   :  { %s1053_s27 = scalar_lea.hbm %s1540_s4, 16 }
 0x364   :  { %p1054_p5 = scmp.ne.s32.totalorder %s1540_s4, %s1053_s27  ;;  %p1057_p6 = scmp.lt.u32.totalorder %s1053_s27, %s1540_s4 }
 0x366   :  { %p1059_p7 = pnand %p1057_p6, %p1054_p5 }
 0x368   :  { %1062 = shalt.err (!%p1059_p7)
}
 0x369   :  { %903 = dma.vmem_to_hbm [thread:$0]  %s901_s22, 16, %s1540_s4, [#allocation3]  }
 0x36a   :  { %1063 = dma.done.wait [#allocation3], 16  }
 0x36b   :  { %1064 = vsyncadd [#allocation3], 4294967280 }
 0x36c   :  { %907 = vsyncpa [#allocation3], 1 }

</bundles_post_ra>
